<compile_context>
chip_gen: v5e
topology: v5e:2x2
jax: 0.10.0
libtpu: 0.0.40
codegen_flags: <defaults>
</compile_context>

<pallas_src>
import numpy as np
import jax
import jax.numpy as jnp
from jax.experimental import pallas as pl
from jax.experimental.pallas import tpu as pltpu

# Problem sizes (in_planes must be >= 16 because the fc hidden width is in_planes // 16).
N, C, H, W = 2, 32, 16, 16
CR = C // 16          # hidden width of the channel-attention MLP
K = 7                 # spatial-attention conv kernel size
PAD = K // 2
HW = H * W


def build_conv_matrix(sa_w):
    """Dense (2*HW, HW) matrix Wc such that for the stacked row-vector
    maps = [avg_map(H*W) | max_map(H*W)], `maps @ Wc` equals the 7x7
    zero-padded (SAME) cross-correlation of the 2-channel map with sa_w
    (PyTorch Conv2d(2, 1, 7, padding=3, bias=False) semantics)."""
    sa_w = np.asarray(sa_w, dtype=np.float32)
    wc = np.zeros((2 * HW, HW), dtype=np.float32)
    for m in range(2):
        for qy in range(H):
            for qx in range(W):
                q = qy * W + qx
                for dh in range(K):
                    py = qy + dh - PAD
                    if py < 0 or py >= H:
                        continue
                    for dw in range(K):
                        px = qx + dw - PAD
                        if px < 0 or px >= W:
                            continue
                        wc[m * HW + py * W + px, q] = sa_w[m, dh, dw]
    return wc


def cbam_kernel(x_ref, w1_ref, w2_ref, wc_ref, o_ref):
    # x_ref : (NB, C, HW)   NCHW-native, lane-dense block (one or all batch elems)
    # w1_ref: (C, CR)  == torch fc[0].weight.T   (Conv2d(C, CR, 1), bias=False)
    # w2_ref: (CR, C)  == torch fc[2].weight.T   (Conv2d(CR, C, 1), bias=False)
    # wc_ref: (2*HW, HW) precomputed zero-padded 7x7 conv matrix
    # o_ref : (NB, C, HW)
    nb = x_ref.shape[0]
    x = x_ref[...]                                      # (NB, C, HW)

    # ---------------- Channel attention (fused avg/max MLP) ----------------
    avg_pool = jnp.mean(x, axis=-1)                     # (NB, C)
    max_pool = jnp.max(x, axis=-1)                      # (NB, C)
    p = jnp.concatenate([avg_pool, max_pool], axis=0)   # (2*NB, C)
    hdd = jnp.maximum(
        jnp.dot(p, w1_ref[...], preferred_element_type=jnp.float32), 0.0)
    mlp = jnp.dot(hdd, w2_ref[...], preferred_element_type=jnp.float32)  # (2*NB, C)
    ca = jax.nn.sigmoid(mlp[:nb] + mlp[nb:])            # (NB, C)
    x_ca = x * ca[:, :, None]                           # (NB, C, HW)

    # ---------------- Spatial attention (7x7 SAME conv as one matmul) -------
    avg_map = jnp.mean(x_ca, axis=1)                    # (NB, HW)
    max_map = jnp.max(x_ca, axis=1)                     # (NB, HW)
    maps = jnp.concatenate([avg_map, max_map], axis=-1)  # (NB, 2*HW)
    conv = jnp.dot(maps, wc_ref[...],
                   preferred_element_type=jnp.float32)  # (NB, HW)
    sa = jax.nn.sigmoid(conv)                           # (NB, HW)

    o_ref[...] = (x_ca * sa[:, None, :]).astype(o_ref.dtype)


def simple_cbam(x_nchw, w1, w2, sa_w):
    """x_nchw: (N, C, H, W) float32.  Returns (N, C, H, W)."""
    n, c, h, w = x_nchw.shape
    assert (n, c, h, w) == (N, C, H, W)

    x_flat = x_nchw.reshape(N, C, HW)                   # free reshape, no transpose/pad
    wc = jnp.asarray(build_conv_matrix(sa_w))

    # v7x has 2 TensorCores: keep one batch element per grid step so the
    # "parallel" axis shards across them.  v5e/v6e: single grid step for the
    # whole batch (per-step overhead ~ the entire compute at this size).
    kind = jax.devices()[0].device_kind.lower()
    nb = 1 if "v7" in kind else N
    grid = (N // nb,)

    out_flat = pl.pallas_call(
        cbam_kernel,
        out_shape=jax.ShapeDtypeStruct((N, C, HW), jnp.float32),
        grid=grid,
        in_specs=[
            pl.BlockSpec((nb, C, HW), lambda b: (b, 0, 0)),
            pl.BlockSpec((C, CR), lambda b: (0, 0)),
            pl.BlockSpec((CR, C), lambda b: (0, 0)),
            pl.BlockSpec((2 * HW, HW), lambda b: (0, 0)),
        ],
        out_specs=pl.BlockSpec((nb, C, HW), lambda b: (b, 0, 0)),
        compiler_params=pltpu.CompilerParams(
            dimension_semantics=("parallel",)),
    )(x_flat, w1, w2, wc)

    return out_flat.reshape(N, C, H, W)


def reference(x_nchw, w1, w2, sa_w):
    """Pure-JAX reference with PyTorch semantics."""
    avg = jnp.mean(x_nchw, axis=(2, 3))                 # (N, C)
    mx = jnp.max(x_nchw, axis=(2, 3))                   # (N, C)

    def fc(p):
        return jnp.maximum(p @ w1, 0.0) @ w2

    ca = jax.nn.sigmoid(fc(avg) + fc(mx))[:, :, None, None]
    x1 = ca * x_nchw

    avg_m = jnp.mean(x1, axis=1, keepdims=True)
    max_m = jnp.max(x1, axis=1, keepdims=True)
    cat = jnp.concatenate([avg_m, max_m], axis=1)       # (N, 2, H, W)
    conv = jax.lax.conv_general_dilated(
        cat, sa_w.reshape(1, 2, K, K), (1, 1), "SAME",
        dimension_numbers=("NCHW", "OIHW", "NCHW"))
    sa = jax.nn.sigmoid(conv)
    return sa * x1


if __name__ == "__main__":
    key = jax.random.PRNGKey(0)
    kx, k1, k2, k3 = jax.random.split(key, 4)

    x = jax.random.normal(kx, (N, C, H, W), dtype=jnp.float32)
    # fc weights (Conv2d 1x1, bias=False), stored transposed: (C, CR) / (CR, C)
    w1 = jax.random.normal(k1, (C, CR), dtype=jnp.float32) * 0.2
    w2 = jax.random.normal(k2, (CR, C), dtype=jnp.float32) * 0.2
    # spatial-attention Conv2d(2, 1, 7, padding=3, bias=False) weights: (2, 7, 7)
    sa_w = jax.random.normal(k3, (2, K, K), dtype=jnp.float32) * 0.1

    out = simple_cbam(x, w1, w2, sa_w)
    out = jax.block_until_ready(out)

    ref = jax.block_until_ready(reference(x, w1, w2, sa_w))
    assert out.shape == (N, C, H, W)
    assert jnp.allclose(out, ref, rtol=1e-3, atol=1e-3), "mismatch vs reference"

    print("KERNEL_OK")
</pallas_src>

<mosaic_0001>
module attributes {stable_mosaic.version = 11 : i64} {
  func.func @cbam_kernel(%arg0: i32, %arg1: memref<2x32x256xf32, #tpu.memory_space<vmem>>, %arg2: memref<32x2xf32, #tpu.memory_space<vmem>>, %arg3: memref<2x32xf32, #tpu.memory_space<vmem>>, %arg4: memref<512x256xf32, #tpu.memory_space<vmem>>, %arg5: memref<2x32x256xf32, #tpu.memory_space<vmem>>) attributes {dimension_semantics = [#tpu.dimension_semantics<parallel>], iteration_bounds = array<i64: 1>, scalar_prefetch = 0 : i64, scratch_operands = 0 : i64, tpu.core_type = #tpu.core_type<tc>, window_params = [{transform_indices = @transform_0, window_bounds = array<i64: 2, 32, 256>}, {pipeline_mode = #tpu.pipeline_mode<synchronous>, transform_indices = @transform_1, window_bounds = array<i64: 32, 2>}, {pipeline_mode = #tpu.pipeline_mode<synchronous>, transform_indices = @transform_2, window_bounds = array<i64: 2, 32>}, {pipeline_mode = #tpu.pipeline_mode<synchronous>, transform_indices = @transform_3, window_bounds = array<i64: 512, 256>}, {transform_indices = @transform_4, window_bounds = array<i64: 2, 32, 256>}]} {
    %c0 = arith.constant 0 : index
    %c0_0 = arith.constant 0 : index
    %c0_1 = arith.constant 0 : index
    %0 = vector.load %arg1[%c0, %c0_0, %c0_1] : memref<2x32x256xf32, #tpu.memory_space<vmem>>, vector<2x32x256xf32>
    %cst = arith.constant dense<0.000000e+00> : vector<2x32xf32>
    %1 = vector.multi_reduction <add>, %0, %cst [2] : vector<2x32x256xf32> to vector<2x32xf32>
    %cst_2 = arith.constant 2.560000e+02 : f32
    %2 = vector.broadcast %cst_2 : f32 to vector<2x32xf32>
    %3 = arith.divf %1, %2 : vector<2x32xf32>
    %cst_3 = arith.constant dense<0xFF800000> : vector<2x32xf32>
    %4 = vector.multi_reduction <maximumf>, %0, %cst_3 [2] : vector<2x32x256xf32> to vector<2x32xf32>
    %5 = tpu.concatenate %3, %4 in 0 : vector<2x32xf32>, vector<2x32xf32> -> vector<4x32xf32>
    %c0_4 = arith.constant 0 : index
    %c0_5 = arith.constant 0 : index
    %6 = vector.load %arg2[%c0_4, %c0_5] : memref<32x2xf32, #tpu.memory_space<vmem>>, vector<32x2xf32>
    %cst_6 = arith.constant dense<0.000000e+00> : vector<4x2xf32>
    %7 = tpu.matmul %5, %6, %cst_6 {dimension_numbers = #tpu.dot_dimension_numbers<[1], [0], [0], [1], [0, 0, 1, 1], [], []>} : vector<4x32xf32>, vector<32x2xf32>, vector<4x2xf32> -> vector<4x2xf32>
    %cst_7 = arith.constant 0.000000e+00 : f32
    %8 = vector.broadcast %cst_7 : f32 to vector<4x2xf32>
    %9 = arith.maximumf %7, %8 : vector<4x2xf32>
    %c0_8 = arith.constant 0 : index
    %c0_9 = arith.constant 0 : index
    %10 = vector.load %arg3[%c0_8, %c0_9] : memref<2x32xf32, #tpu.memory_space<vmem>>, vector<2x32xf32>
    %cst_10 = arith.constant dense<0.000000e+00> : vector<4x32xf32>
    %11 = tpu.matmul %9, %10, %cst_10 {dimension_numbers = #tpu.dot_dimension_numbers<[1], [0], [0], [1], [0, 0, 1, 1], [], []>} : vector<4x2xf32>, vector<2x32xf32>, vector<4x32xf32> -> vector<4x32xf32>
    %12 = vector.extract_strided_slice %11 {offsets = [0, 0], sizes = [2, 32], strides = [1, 1]} : vector<4x32xf32> to vector<2x32xf32>
    %13 = vector.extract_strided_slice %11 {offsets = [2, 0], sizes = [2, 32], strides = [1, 1]} : vector<4x32xf32> to vector<2x32xf32>
    %14 = arith.addf %12, %13 : vector<2x32xf32>
    %15 = arith.negf %14 : vector<2x32xf32>
    %16 = math.exp %15 : vector<2x32xf32>
    %cst_11 = arith.constant 1.000000e+00 : f32
    %17 = vector.broadcast %cst_11 : f32 to vector<2x32xf32>
    %18 = arith.addf %17, %16 : vector<2x32xf32>
    %19 = arith.divf %17, %18 : vector<2x32xf32>
    %20 = vector.shape_cast %19 : vector<2x32xf32> to vector<2x32x1xf32>
    %21 = vector.broadcast %20 : vector<2x32x1xf32> to vector<2x32x256xf32>
    %22 = arith.mulf %0, %21 : vector<2x32x256xf32>
    %cst_12 = arith.constant dense<0.000000e+00> : vector<2x256xf32>
    %23 = vector.multi_reduction <add>, %22, %cst_12 [1] : vector<2x32x256xf32> to vector<2x256xf32>
    %cst_13 = arith.constant 3.200000e+01 : f32
    %24 = vector.broadcast %cst_13 : f32 to vector<2x256xf32>
    %25 = arith.divf %23, %24 : vector<2x256xf32>
    %cst_14 = arith.constant dense<0xFF800000> : vector<2x256xf32>
    %26 = vector.multi_reduction <maximumf>, %22, %cst_14 [1] : vector<2x32x256xf32> to vector<2x256xf32>
    %27 = tpu.concatenate %25, %26 in 1 : vector<2x256xf32>, vector<2x256xf32> -> vector<2x512xf32>
    %c0_15 = arith.constant 0 : index
    %c0_16 = arith.constant 0 : index
    %28 = vector.load %arg4[%c0_15, %c0_16] : memref<512x256xf32, #tpu.memory_space<vmem>>, vector<512x256xf32>
    %cst_17 = arith.constant dense<0.000000e+00> : vector<2x256xf32>
    %29 = tpu.matmul %27, %28, %cst_17 {dimension_numbers = #tpu.dot_dimension_numbers<[1], [0], [0], [1], [0, 0, 1, 1], [], []>} : vector<2x512xf32>, vector<512x256xf32>, vector<2x256xf32> -> vector<2x256xf32>
    %30 = arith.negf %29 : vector<2x256xf32>
    %31 = math.exp %30 : vector<2x256xf32>
    %cst_18 = arith.constant 1.000000e+00 : f32
    %32 = vector.broadcast %cst_18 : f32 to vector<2x256xf32>
    %33 = arith.addf %32, %31 : vector<2x256xf32>
    %34 = arith.divf %32, %33 : vector<2x256xf32>
    %35 = vector.shape_cast %34 : vector<2x256xf32> to vector<2x1x256xf32>
    %36 = vector.broadcast %35 : vector<2x1x256xf32> to vector<2x32x256xf32>
    %37 = arith.mulf %22, %36 : vector<2x32x256xf32>
    %c0_19 = arith.constant 0 : index
    %c0_20 = arith.constant 0 : index
    %c0_21 = arith.constant 0 : index
    %38 = vector.load %arg5[%c0_19, %c0_20, %c0_21] : memref<2x32x256xf32, #tpu.memory_space<vmem>>, vector<2x32x256xf32>
    tpu.vector_store %arg5[%c0_19, %c0_20, %c0_21], %37 {strides = array<i32>} : memref<2x32x256xf32, #tpu.memory_space<vmem>>, vector<2x32x256xf32>,
    return
  }
  func.func @transform_0(%arg0: i32) -> (i32, i32, i32) {
    %c0_i32 = arith.constant 0 : i32
    %c0_i32_0 = arith.constant 0 : i32
    %c0_i32_1 = arith.constant 0 : i32
    return %arg0, %c0_i32, %c0_i32_0 : i32, i32, i32
  }
  func.func @transform_1(%arg0: i32) -> (i32, i32) {
    %c0_i32 = arith.constant 0 : i32
    %c0_i32_0 = arith.constant 0 : i32
    %c0_i32_1 = arith.constant 0 : i32
    return %c0_i32, %c0_i32_0 : i32, i32
  }
  func.func @transform_2(%arg0: i32) -> (i32, i32) {
    %c0_i32 = arith.constant 0 : i32
    %c0_i32_0 = arith.constant 0 : i32
    %c0_i32_1 = arith.constant 0 : i32
    return %c0_i32, %c0_i32_0 : i32, i32
  }
  func.func @transform_3(%arg0: i32) -> (i32, i32) {
    %c0_i32 = arith.constant 0 : i32
    %c0_i32_0 = arith.constant 0 : i32
    %c0_i32_1 = arith.constant 0 : i32
    return %c0_i32, %c0_i32_0 : i32, i32
  }
  func.func @transform_4(%arg0: i32) -> (i32, i32, i32) {
    %c0_i32 = arith.constant 0 : i32
    %c0_i32_0 = arith.constant 0 : i32
    %c0_i32_1 = arith.constant 0 : i32
    return %arg0, %c0_i32, %c0_i32_0 : i32, i32, i32
  }
}

</mosaic_0001>

<bundles_post_ra>
// kernel: tpu_custom_call.1
= control target key start
LH: loop header
LB: loop body
LE: loop exit
PB: predicated region body
PF: predicated region fallthrough
CT: control target
= control target key end

     0   :  { %9 = vsyncpa [#allocation3], 0  ;;  %s1198_s0 = inlined_call_operand.hbm [shape: f32[2,32,256], index: 0, kind: input, shape index: {}]   ;;  %s1199_s1 = inlined_call_operand.vmem [shape: f32[32,2], index: 1, kind: input, shape index: {}]   ;;  %s1200_s2 = inlined_call_operand.vmem [shape: f32[2,32], index: 2, kind: input, shape index: {}]   ;;  %s1201_s3 = inlined_call_operand.hbm [shape: f32[512,256], index: 3, kind: input, shape index: {}]   ;;  %s1202_s4 = inlined_call_operand.hbm [shape: f32[2,32,256], index: 4, kind: output, shape index: {}]  }
   0x1   :  { %10 = vsyncpa [#allocation6], 0 }
   0x2   :  { %11 = vsyncpa [#allocation4], 0  ;;  %s16_s17 = sshll.u32 %s1198_s0, 4  ;;  %s942_s18 = smov [#allocation2]   ;;  %s17_s17 = int_to_ptr.hbm [resolvable:$true] %s16_s17 }
   0x3   :  { %s18_s19 = sshll.u32 %s942_s18, 4  ;;  %s33_s22 = sshll.u32 %s1201_s3, 4  ;;  %s19_s19 = int_to_ptr.vmem [resolvable:$true] %s18_s19  ;;  %s34_s22 = int_to_ptr.hbm [resolvable:$true] %s33_s22 }
   0x4   :  { %s943_s23 = smov 256   ;;  %s944_s24 = smov 16  }
   0x5   :  { %24 = dma.hbm_to_vmem [thread:$0]  %s17_s17, 2048, %s19_s19, [#allocation3], %s943_s23, %s943_s23, %s944_s24  }
   0x6   :  { %s945_s25 = smov [#allocation5]  }
   0x7   :  { %s35_s26 = sshll.u32 %s945_s25, 4  ;;  %s36_s26 = int_to_ptr.vmem [resolvable:$true] %s35_s26 }
   0x8   :  { %41 = dma.hbm_to_vmem [thread:$0]  %s34_s22, 16384, %s36_s26, [#allocation6], %s943_s23, %s943_s23, %s944_s24  }
   0x9   :  { %936 = dma.done.wait [#allocation3], 2048  }
   0xa   :  { %937 = vsyncadd [#allocation3], 4294965248 }
   0xb   :  { %938 = dma.done.wait [#allocation6], 16384  }
   0xc   :  { %939 = vsyncadd [#allocation6], 4294950912  ;;  %v986_v0 = vld [vmem:[#allocation2 + $0x40] sm:$0xff]  ;;  %v988_v1 = vld [vmem:[#allocation2 + $0x48] sm:$0xff]  ;;  %v946_v35 = vmov 256.0   ;;  %v137_v51 = vlaneseq  ;;  %vm142_vm1 = vcmask 130112  }
   0xd   :  { %v990_v2 = vld [vmem:[#allocation2] sm:$0xff]  ;;  %v78_v3 = vadd.f32 %v988_v1, %v986_v0  ;;  %v994_v4 = vld [vmem:[#allocation2 + $0x8] sm:$0xff]  ;;  %v1004_v9 = vld [vmem:[#allocation2 + $0x50] sm:$0xff]  ;;  %v117_v25 = vmax.f32 %v986_v0, %v988_v1  ;;  %848 = vrcp.f32 %v946_v35  ;;  %vm146_vm2 = vcmask 195712   ;;  %s813_s11 = sshll.u32 %s1202_s4, 4  ;;  %s814_s11 = int_to_ptr.hbm [resolvable:$true] %s813_s11 }
   0xe   :  { %v996_v5 = vld [vmem:[#allocation2 + $0x20] sm:$0xff]  ;;  %v998_v6 = vld [vmem:[#allocation2 + $0x28] sm:$0xff]  ;;  %v66_v7 = vadd.f32 %v994_v4, %v990_v2  ;;  %v1006_v10 = vld [vmem:[#allocation2 + $0x58] sm:$0xff]  ;;  %v105_v24 = vmax.f32 %v990_v2, %v994_v4  ;;  %v138_v56 = vand.u32 127, %v137_v51  ;;  %vm150_vm3 = vcmask 261312  }
   0xf   :  { %v72_v8 = vadd.f32 %v998_v6, %v996_v5  ;;  %79 = vadd.xlane.f32.xlu1 %v78_v3  ;;  %v1008_v11 = vld [vmem:[#allocation2 + $0x10] sm:$0xff]  ;;  %v1010_v12 = vld [vmem:[#allocation2 + $0x18] sm:$0xff]  ;;  %v1012_v13 = vld [vmem:[#allocation2 + $0x60] sm:$0xff]  ;;  %v81_v15 = vadd.f32 %v1006_v10, %v1004_v9  ;;  %v120_v27 = vmax.f32 %v1004_v9, %v1006_v10  ;;  %v111_v29 = vmax.f32 %v996_v5, %v998_v6 }
  0x10   :  { %67 = vadd.xlane.f32.xlu0 %v66_v7  ;;  %v1014_v14 = vld [vmem:[#allocation2 + $0x68] sm:$0xff]  ;;  %v69_v16 = vadd.f32 %v1010_v12, %v1008_v11  ;;  %v1022_v18 = vld [vmem:[#allocation2 + $0x70] sm:$0xff]  ;;  %v1024_v19 = vld [vmem:[#allocation2 + $0x78] sm:$0xff]  ;;  %v108_v26 = vmax.f32 %v1008_v11, %v1010_v12  ;;  %v140_v58 = vadd.s32 4294967288, %v138_v56  ;;  %v144_v62 = vadd.s32 4294967280, %v138_v56 }
  0x11   :  { %73 = vadd.xlane.f32.xlu2 %v72_v8  ;;  %v84_v17 = vadd.f32 %v1014_v14, %v1012_v13  ;;  %v1026_v20 = vld [vmem:[#allocation2 + $0x30] sm:$0xff]  ;;  %v1028_v21 = vld [vmem:[#allocation2 + $0x38] sm:$0xff]  ;;  %v87_v22 = vadd.f32 %v1024_v19, %v1022_v18  ;;  %v123_v28 = vmax.f32 %v1012_v13, %v1014_v14  ;;  %v126_v31 = vmax.f32 %v1022_v18, %v1024_v19  ;;  %v190_v42 = vld [vmem:[%s1199_s1 + $0x8] sm:$0xff] }
  0x12   :  { %v75_v23 = vadd.f32 %v1028_v21, %v1026_v20  ;;  %v114_v30 = vmax.f32 %v1026_v20, %v1028_v21  ;;  %v192_v36 = vld [vmem:[%s1199_s1 + $0x18] sm:$0xff]  ;;  %v191_v41 = vld [vmem:[%s1199_s1 + $0x10] sm:$0xff]  ;;  %v189_v44 = vld [vmem:[%s1199_s1] sm:$0xff]  ;;  %v148_v8 = vadd.s32 4294967272, %v138_v56  ;;  %vm159_vm4 = vcmask 1041409  }
  0x13   :  { %209 = vmatpush.msra.mxu0 %v192_v36  ;;  %v849_v38 = vpop.eup %848  ;;  %vm184_vm5 = vcmask 1043459   ;;  %vm187_vm6 = vcmask 1041408   ;;  %vm193_vm7 = vcmask 261120   ;;  %vm219_vm8 = vcmask 15360  }
  0x14   :  { %v91_v43 = vmul.f32 256.0, %v849_v38  ;;  %vm95_vm0 = vweird.f32 %v849_v38 }
  0x15   :  { %210 = vmatpush.msra.mxu0 %v191_v41 }
  0x16   :  { %v92_v45 = vsub.f32 1.0, %v91_v43 }
  0x17   :  { %82 = vadd.xlane.f32.xlu1 %v81_v15  ;;  %211 = vmatpush.msra.mxu0 %v190_v42 }
  0x18   :  { %70 = vadd.xlane.f32.xlu0 %v69_v16  ;;  %v93_v49 = vmul.f32 %v849_v38, %v92_v45 }
  0x19   :  { %85 = vadd.xlane.f32.xlu2 %v84_v17  ;;  %212 = vmatpush.msra.mxu0 %v189_v44 }
  0x1a   :  { %v94_v50 = vadd.f32 %v849_v38, %v93_v49 }
  0x1c   :  { %v96_v55 = vsel %vm95_vm0, %v849_v38, %v94_v50 }
  0x1f   :  { %88 = vadd.xlane.f32.xlu1 %v87_v22 }
  0x20   :  { %76 = vadd.xlane.f32.xlu0 %v75_v23 }
  0x21   :  { %106 = vmax.xlane.f32.xlu2 %v105_v24 }
  0x27   :  { %118 = vmax.xlane.f32.xlu1 %v117_v25 }
  0x28   :  { %109 = vmax.xlane.f32.xlu0 %v108_v26 }
  0x29   :  { %121 = vmax.xlane.f32.xlu2 %v120_v27 }
  0x2f   :  { %124 = vmax.xlane.f32.xlu1 %v123_v28 }
  0x30   :  { %112 = vmax.xlane.f32.xlu0 %v111_v29 }
  0x31   :  { %115 = vmax.xlane.f32.xlu2 %v114_v30 }
  0x38   :  { %127 = vmax.xlane.f32.xlu0 %v126_v31 }
  0x82   :  { %v80_v32 = vpop.xlane.xlu1 %79 }
  0x83   :  { %v68_v33 = vpop.xlane.xlu0 %67  ;;  %v101_v57 = vmul.f32 %v96_v55, %v80_v32 }
  0x84   :  { %v74_v34 = vpop.xlane.xlu2 %73  ;;  %v97_v61 = vmul.f32 %v96_v55, %v68_v33 }
  0x85   :  { %v152_v63 = vperm.slane %v101_v57, %v138_v56  ;;  %v99_v3 = vmul.f32 %v96_v55, %v74_v34 }
  0x86   :  { %v139_v24 = vperm.slane %v97_v61, %v138_v56 }
  0x87   :  { %v145_v30 = vperm.slane %v99_v3, %v144_v62 }
  0x8a   :  { %v83_v37 = vpop.xlane.xlu1 %82 }
  0x8b   :  { %v71_v39 = vpop.xlane.xlu0 %70  ;;  %v102_v59 = vmul.f32 %v96_v55, %v83_v37 }
  0x8c   :  { %v86_v40 = vpop.xlane.xlu2 %85  ;;  %v98_v60 = vmul.f32 %v96_v55, %v71_v39 }
  0x8d   :  { %v103_v7 = vmul.f32 %v96_v55, %v86_v40  ;;  %v153_v16 = vperm.slane %v102_v59, %v140_v58  ;;  %v271_v59 = vshrl.u32 %v137_v51, 7 }
  0x8e   :  { %v141_v17 = vperm.slane %v98_v60, %v140_v58 }
  0x8f   :  { %v155_v31 = vperm.slane %v103_v7, %v144_v62  ;;  %v154_v34 = vsel %vm142_vm1, %v153_v16, %v152_v63  ;;  %842 = vset.pattern.permute.xlu0 %v271_v59  ;;  %840 = vset.pattern.permute.xlu1 %v271_v59  ;;  %v278_v60 = vadd.s32 8, %v271_v59 }
  0x90   :  { %v143_v35 = vsel %vm142_vm1, %v141_v17, %v139_v24 }
  0x91   :  { %v156_v42 = vsel %vm146_vm2, %v155_v31, %v154_v34  ;;  %v147_v45 = vsel %vm146_vm2, %v145_v30, %v143_v35  ;;  %841 = vset.pattern.permute.xlu2 %v278_v60  ;;  %v284_v30 = vadd.s32 16, %v271_v59  ;;  %v290_v31 = vadd.s32 24, %v271_v59  ;;  %v464_v34 = vld [vmem:[#allocation5 + $0xf0] sm:$0xff] }
  0x92   :  { %v89_v46 = vpop.xlane.xlu1 %88  ;;  %v496_v35 = vld [vmem:[#allocation5 + $0x1f0] sm:$0xff]  ;;  %562 = vmatpush.msra.mxu2 %v464_v34 }
  0x93   :  { %v77_v47 = vpop.xlane.xlu0 %76  ;;  %v104_v22 = vmul.f32 %v96_v55, %v89_v46  ;;  %582 = vmatpush.msra.mxu3 %v496_v35  ;;  %v452_v59 = vld [vmem:[#allocation5 + $0x90] sm:$0xff] }
  0x94   :  { %v107_v48 = vpop.xlane.xlu2 %106  ;;  %v100_v23 = vmul.f32 %v96_v55, %v77_v47  ;;  %v484_v60 = vld [vmem:[#allocation5 + $0x190] sm:$0xff] }
  0x95   :  { %v170_v25 = vperm.slane %v107_v48, %v138_v56  ;;  %v157_v36 = vperm.slane %v104_v22, %v148_v8  ;;  %v440_v35 = vld [vmem:[#allocation5 + $0x30] sm:$0xff] }
  0x96   :  { %v149_v37 = vperm.slane %v100_v23, %v148_v8 }
  0x97   :  { %v158_v48 = vsel %vm150_vm3, %v157_v36, %v156_v42  ;;  %v526_v36 = vld [vmem:[#allocation5 + $0x2e0] sm:$0xff]  ;;  %v460_v42 = vld [vmem:[#allocation5 + $0xd0] sm:$0xff] }
  0x98   :  { %v151_v47 = vsel %vm150_vm3, %v149_v37, %v147_v45  ;;  %v558_v37 = vld [vmem:[#allocation5 + $0x3e0] sm:$0xff] }
  0x99   :  { %v554_v45 = vld [vmem:[#allocation5 + $0x3c0] sm:$0xff] }
  0x9a   :  { %v119_v53 = vpop.xlane.xlu1 %118 }
  0x9b   :  { %v110_v52 = vpop.xlane.xlu0 %109  ;;  %v177_v26 = vperm.slane %v119_v53, %v138_v56  ;;  %v160_v53 = vsel %vm159_vm4, %v158_v48, %v151_v47  ;;  %v218_v56 = vld [vmem:[%s1200_s2] sm:$0x3]  ;;  %v520_v48 = vld [vmem:[#allocation5 + $0x2b0] sm:$0xff]  ;;  %s948_s2 = smov [#allocation7]  }
  0x9c   :  { %v122_v54 = vpop.xlane.xlu2 %121  ;;  %v171_v27 = vperm.slane %v110_v52, %v140_v58  ;;  %828 = vmatpush.msk.msra.mxu1 %vm187_vm6, %v218_v56  ;;  %v490_v47 = vld [vmem:[#allocation5 + $0x1c0] sm:$0xff]  ;;  %s811_s8 = sshll.u32 %s948_s2, 4  ;;  %s812_s8 = int_to_ptr.vmem [resolvable:$true] %s811_s8 }
  0x9d   :  { %v178_v28 = vperm.slane %v122_v54, %v140_v58  ;;  %v486_v56 = vld [vmem:[#allocation5 + $0x1a0] sm:$0xff] }
  0x9e   :  { %v172_v39 = vsel %vm142_vm1, %v171_v27, %v170_v25 }
  0x9f   :  { %v179_v40 = vsel %vm142_vm1, %v178_v28, %v177_v26 }
  0xa2   :  { %v125_v29 = vpop.xlane.xlu1 %124 }
  0xa3   :  { %v113_v15 = vpop.xlane.xlu0 %112  ;;  %v180_v38 = vperm.slane %v125_v29, %v144_v62 }
  0xa4   :  { %v173_v32 = vperm.slane %v113_v15, %v144_v62  ;;  %v116_v33 = vpop.xlane.xlu2 %115 }
  0xa5   :  { %v175_v41 = vperm.slane %v116_v33, %v148_v8  ;;  %v181_v49 = vsel %vm146_vm2, %v180_v38, %v179_v40  ;;  %v560_v33 = vld [vmem:[#allocation5 + $0x3f0] sm:$0xff]  ;;  %v462_v38 = vld [vmem:[#allocation5 + $0xe0] sm:$0xff] }
  0xa6   :  { %v174_v43 = vsel %vm146_vm2, %v173_v32, %v172_v39  ;;  %v528_v32 = vld [vmem:[#allocation5 + $0x2f0] sm:$0xff]  ;;  %622 = vmatpush.msrb.mxu0 %v560_v33  ;;  %v494_v39 = vld [vmem:[#allocation5 + $0x1e0] sm:$0xff]  ;;  %563 = vmatpush.msra.mxu2 %v462_v38 }
  0xa7   :  { %v176_v50 = vsel %vm150_vm3, %v175_v41, %v174_v43  ;;  %602 = vmatpush.msrb.mxu1 %v528_v32  ;;  %v524_v40 = vld [vmem:[#allocation5 + $0x2d0] sm:$0xff]  ;;  %583 = vmatpush.msra.mxu3 %v494_v39  ;;  %v534_v38 = vld [vmem:[#allocation5 + $0x320] sm:$0xff] }
  0xa8   :  { %623 = vmatpush.msrb.mxu0 %v558_v37  ;;  %v556_v41 = vld [vmem:[#allocation5 + $0x3d0] sm:$0xff]  ;;  %564 = vmatpush.msra.mxu2 %v460_v42  ;;  %v502_v37 = vld [vmem:[#allocation5 + $0x220] sm:$0xff] }
  0xa9   :  { %603 = vmatpush.msrb.mxu1 %v526_v36  ;;  %v492_v43 = vld [vmem:[#allocation5 + $0x1d0] sm:$0xff]  ;;  %v438_v39 = vld [vmem:[#allocation5 + $0x20] sm:$0xff] }
  0xaa   :  { %624 = vmatpush.msrb.mxu0 %v556_v41  ;;  %584 = vmatpush.msra.mxu3 %v492_v43  ;;  %v504_v32 = vld [vmem:[#allocation5 + $0x230] sm:$0xff] }
  0xab   :  { %v128_v44 = vpop.xlane.xlu0 %127  ;;  %604 = vmatpush.msrb.mxu1 %v524_v40  ;;  %v536_v33 = vld [vmem:[#allocation5 + $0x330] sm:$0xff]  ;;  %v470_v40 = vld [vmem:[#allocation5 + $0x120] sm:$0xff] }
  0xac   :  { %v182_v46 = vperm.slane %v128_v44, %v148_v8  ;;  %v522_v44 = vld [vmem:[#allocation5 + $0x2c0] sm:$0xff]  ;;  %625 = vmatpush.msrb.mxu0 %v554_v45  ;;  %585 = vmatpush.msra.mxu3 %v490_v47  ;;  %v472_v36 = vld [vmem:[#allocation5 + $0x130] sm:$0xff]  ;;  %v529_v47 = vld [vmem:[#allocation5 + $0x2f8] sm:$0xff] }
  0xad   :  { %605 = vmatpush.msrb.mxu1 %v522_v44  ;;  %v500_v41 = vld [vmem:[#allocation5 + $0x210] sm:$0xff]  ;;  %v498_v45 = vld [vmem:[#allocation5 + $0x200] sm:$0xff] }
  0xae   :  { %v183_v52 = vsel %vm150_vm3, %v182_v46, %v181_v49  ;;  %v458_v46 = vld [vmem:[#allocation5 + $0xc0] sm:$0xff]  ;;  %v552_v49 = vld [vmem:[#allocation5 + $0x3b0] sm:$0xff] }
  0xaf   :  { %v185_v54 = vsel %vm184_vm5, %v183_v52, %v176_v50  ;;  %565 = vmatpush.msra.mxu2 %v458_v46  ;;  %v456_v50 = vld [vmem:[#allocation5 + $0xb0] sm:$0xff]  ;;  %606 = vmatpush.msrb.mxu1 %v520_v48  ;;  %v530_v46 = vld [vmem:[#allocation5 + $0x300] sm:$0xff]  ;;  %v561_v48 = vld [vmem:[#allocation5 + $0x3f8] sm:$0xff] }
  0xb0   :  { %v188_v55 = vsel %vm187_vm6, %v160_v53, %v185_v54  ;;  %v488_v52 = vld [vmem:[#allocation5 + $0x1b0] sm:$0xff]  ;;  %626 = vmatpush.msrb.mxu0 %v552_v49  ;;  %v518_v53 = vld [vmem:[#allocation5 + $0x2a0] sm:$0xff]  ;;  %vm763_vm6 = vcmask 1040384  }
  0xb1   :  { %827 = vmatmul.msk.f32.vlgmr.msra.gmra.mxu0 %vm193_vm7, %v188_v55  ;;  %v550_v54 = vld [vmem:[#allocation5 + $0x3a0] sm:$0xff]  ;;  %566 = vmatpush.msra.mxu2 %v456_v50  ;;  %v532_v42 = vld [vmem:[#allocation5 + $0x310] sm:$0xff] }
  0xb2   :  { %v454_v55 = vld [vmem:[#allocation5 + $0xa0] sm:$0xff]  ;;  %586 = vmatpush.msra.mxu3 %v488_v52  ;;  %607 = vmatpush.msrb.mxu1 %v518_v53  ;;  %v436_v43 = vld [vmem:[#allocation5 + $0x10] sm:$0xff]  ;;  %v465_v52 = vld [vmem:[#allocation5 + $0xf8] sm:$0xff] }
  0xb3   :  { %627 = vmatpush.msrb.mxu0 %v550_v54  ;;  %567 = vmatpush.msra.mxu2 %v454_v55  ;;  %v468_v44 = vld [vmem:[#allocation5 + $0x110] sm:$0xff]  ;;  %v434_v49 = vld [vmem:[#allocation5] sm:$0xff]  ;;  %v497_v53 = vld [vmem:[#allocation5 + $0x1f8] sm:$0xff] }
  0xb4   :  { %587 = vmatpush.msra.mxu3 %v486_v56  ;;  %v466_v50 = vld [vmem:[#allocation5 + $0x100] sm:$0xff]  ;;  %v527_v54 = vld [vmem:[#allocation5 + $0x2e8] sm:$0xff] }
  0xb5   :  { %568 = vmatpush.msra.mxu2 %v452_v59  ;;  %v559_v55 = vld [vmem:[#allocation5 + $0x3e8] sm:$0xff] }
  0xb6   :  { %588 = vmatpush.msra.mxu3 %v484_v60  ;;  %v463_v56 = vld [vmem:[#allocation5 + $0xe8] sm:$0xff]  ;;  %v557_v60 = vld [vmem:[#allocation5 + $0x3d8] sm:$0xff] }
 0x12e   :  { %v214_v57 = vpop.f32.mrf.mxu0 }
 0x12f   :  { %v217_v58 = vmax.f32 %v214_v57, 0.0  ;;  %v516_v57 = vld [vmem:[#allocation5 + $0x290] sm:$0xff] }
 0x130   :  { %608 = vmatpush.msrb.mxu1 %v516_v57  ;;  %v495_v57 = vld [vmem:[#allocation5 + $0x1e8] sm:$0xff] }
 0x131   :  { %829 = vmatmul.msk.f32.vlgmr.msra.gmra.mxu1 %vm219_vm8, %v217_v58  ;;  %v548_v58 = vld [vmem:[#allocation5 + $0x390] sm:$0xff] }
 0x132   :  { %628 = vmatpush.msrb.mxu0 %v548_v58  ;;  %v525_v58 = vld [vmem:[#allocation5 + $0x2d8] sm:$0xff] }
 0x1ae   :  { %v243_v61 = vpop.f32.mrf.mxu1 }
 0x1af   :  { %v247_v62 = vrot.slane %v243_v61, 2 }
 0x1b1   :  { %v249_v63 = vadd.f32 %v247_v62, %v243_v61  ;;  %v514_v61 = vld [vmem:[#allocation5 + $0x280] sm:$0xff] }
 0x1b2   :  { %v546_v62 = vld [vmem:[#allocation5 + $0x380] sm:$0xff]  ;;  %609 = vmatpush.msrb.mxu1 %v514_v61  ;;  %v461_v61 = vld [vmem:[#allocation5 + $0xd8] sm:$0xff] }
 0x1b3   :  { %v830_v3 = vmul.f32 -1.442695, %v249_v63  ;;  %v450_v63 = vld [vmem:[#allocation5 + $0x80] sm:$0xff]  ;;  %629 = vmatpush.msrb.mxu0 %v546_v62  ;;  %v493_v62 = vld [vmem:[#allocation5 + $0x1d8] sm:$0xff] }
 0x1b4   :  { %569 = vmatpush.msra.mxu2 %v450_v63  ;;  %v523_v63 = vld [vmem:[#allocation5 + $0x2c8] sm:$0xff] }
 0x1b5   :  { %850 = vpow2.f32 %v830_v3  ;;  %v482_v3 = vld [vmem:[#allocation5 + $0x180] sm:$0xff] }
 0x1b6   :  { %589 = vmatpush.msra.mxu3 %v482_v3  ;;  %v555_v3 = vld [vmem:[#allocation5 + $0x3c8] sm:$0xff] }
 0x1bb   :  { %v851_v7 = vpop.eup %850 }
 0x1bc   :  { %v253_v8 = vadd.f32 1.0, %v851_v7  ;;  %v512_v7 = vld [vmem:[#allocation5 + $0x270] sm:$0xff] }
 0x1bd   :  { %610 = vmatpush.msrb.mxu1 %v512_v7  ;;  %v459_v7 = vld [vmem:[#allocation5 + $0xc8] sm:$0xff] }
 0x1be   :  { %852 = vrcp.f32 %v253_v8  ;;  %v265_v22 = vand.u32 2147483648, %v253_v8  ;;  %v263_v24 = vand.u32 2147483647, %v253_v8  ;;  %vm259_vm10 = vweird.f32 %v253_v8 }
 0x1c0   :  { %v266_v25 = vor.u32 1.1754944e-38, %v265_v22  ;;  %vm264_vm12 = vcmp.eq.f32.partialorder %v263_v24, 8.507059e+37  ;;  %v542_v22 = vld [vmem:[#allocation5 + $0x360] sm:$0xff] }
 0x1c1   :  { %v478_v24 = vld [vmem:[#allocation5 + $0x160] sm:$0xff] }
 0x1c4   :  { %v853_v15 = vpop.eup %852 }
 0x1c5   :  { %v255_v16 = vmul.f32 %v853_v15, %v253_v8  ;;  %vm260_vm9 = vweird.f32 %v853_v15  ;;  %v544_v8 = vld [vmem:[#allocation5 + $0x370] sm:$0xff] }
 0x1c6   :  { %vm261_vm11 = vmor %vm259_vm10, %vm260_vm9  ;;  %630 = vmatpush.msrb.mxu0 %v544_v8  ;;  %v491_v8 = vld [vmem:[#allocation5 + $0x1c8] sm:$0xff] }
 0x1c7   :  { %v256_v17 = vsub.f32 1.0, %v255_v16  ;;  %v480_v16 = vld [vmem:[#allocation5 + $0x170] sm:$0xff] }
 0x1c8   :  { %590 = vmatpush.msra.mxu3 %v480_v16  ;;  %631 = vmatpush.msrb.mxu0 %v542_v22  ;;  %v553_v16 = vld [vmem:[#allocation5 + $0x3b8] sm:$0xff] }
 0x1c9   :  { %v257_v23 = vmul.f32 %v853_v15, %v256_v17  ;;  %v510_v17 = vld [vmem:[#allocation5 + $0x260] sm:$0xff]  ;;  %v489_v22 = vld [vmem:[#allocation5 + $0x1b8] sm:$0xff] }
 0x1ca   :  { %611 = vmatpush.msrb.mxu1 %v510_v17  ;;  %591 = vmatpush.msra.mxu3 %v478_v24  ;;  %v457_v17 = vld [vmem:[#allocation5 + $0xb8] sm:$0xff]  ;;  %v551_v24 = vld [vmem:[#allocation5 + $0x3a8] sm:$0xff] }
 0x1cb   :  { %v258_v51 = vadd.f32 %v853_v15, %v257_v23  ;;  %v446_v23 = vld [vmem:[#allocation5 + $0x60] sm:$0xff] }
 0x1cd   :  { %v262_v26 = vsel %vm261_vm11, %v853_v15, %v258_v51  ;;  %v448_v15 = vld [vmem:[#allocation5 + $0x70] sm:$0xff] }
 0x1ce   :  { %v267_v27 = vsel %vm264_vm12, %v266_v25, %v262_v26  ;;  %570 = vmatpush.msra.mxu2 %v448_v15  ;;  %v508_v51 = vld [vmem:[#allocation5 + $0x250] sm:$0xff]  ;;  %v521_v15 = vld [vmem:[#allocation5 + $0x2b8] sm:$0xff] }
 0x1cf   :  { %v294_v28 = vperm.slane %v267_v27, 1  ;;  %v269_v29 = vperm.slane %v267_v27, 0  ;;  %v540_v25 = vld [vmem:[#allocation5 + $0x350] sm:$0xff]  ;;  %612 = vmatpush.msrb.mxu1 %v508_v51 }
 0x1d0   :  { %571 = vmatpush.msra.mxu2 %v446_v23  ;;  %632 = vmatpush.msrb.mxu0 %v540_v25  ;;  %v444_v26 = vld [vmem:[#allocation5 + $0x50] sm:$0xff]  ;;  %v519_v23 = vld [vmem:[#allocation5 + $0x2a8] sm:$0xff] }
 0x1d1   :  { %299 = vperm.xlu0 %842, %v294_v28   ;;  %280 = vperm.xlu2 %841, %v269_v29   ;;  %v476_v27 = vld [vmem:[#allocation5 + $0x150] sm:$0xff] }
 0x1d2   :  { %274 = vperm.xlu1 %840, %v269_v29   ;;  %572 = vmatpush.msra.mxu2 %v444_v26  ;;  %v455_v26 = vld [vmem:[#allocation5 + $0xa8] sm:$0xff] }
 0x1d3   :  { %592 = vmatpush.msra.mxu3 %v476_v27  ;;  %v487_v27 = vld [vmem:[#allocation5 + $0x1a8] sm:$0xff] }
 0x1d9   :  { %305 = vperm.xlu2 %841, %v294_v28   ;;  %847 = vset.pattern.permute.xlu0 %v290_v31 }
 0x1da   :  { %843 = vset.pattern.permute.xlu1 %v284_v30 }
 0x1e1   :  { %844 = vset.pattern.permute.xlu2 %v284_v30  ;;  %v442_v30 = vld [vmem:[#allocation5 + $0x40] sm:$0xff] }
 0x1e2   :  { %286 = vperm.xlu1 %843, %v269_v29   ;;  %573 = vmatpush.msra.mxu2 %v442_v30  ;;  %v453_v30 = vld [vmem:[#allocation5 + $0x98] sm:$0xff] }
 0x1e4   :  { %574 = vmatpush.msra.mxu2 %v440_v35  ;;  %v515_v35 = vld [vmem:[#allocation5 + $0x288] sm:$0xff] }
 0x1e6   :  { %575 = vmatpush.msra.mxu2 %v438_v39 }
 0x1e8   :  { %576 = vmatpush.msra.mxu2 %v436_v43 }
 0x1e9   :  { %311 = vperm.xlu2 %844, %v294_v28  }
 0x1ea   :  { %845 = vset.pattern.permute.xlu1 %v290_v31  ;;  %577 = vmatpush.msra.mxu2 %v434_v49  ;;  %v447_v49 = vld [vmem:[#allocation5 + $0x68] sm:$0xff] }
 0x1ec   :  { %642 = vmatpush.msrb.mxu2 %v465_v52 }
 0x1ee   :  { %643 = vmatpush.msrb.mxu2 %v463_v56 }
 0x1f0   :  { %644 = vmatpush.msrb.mxu2 %v461_v61 }
 0x1f1   :  { %846 = vset.pattern.permute.xlu2 %v290_v31  ;;  %v474_v31 = vld [vmem:[#allocation5 + $0x140] sm:$0xff] }
 0x1f2   :  { %292 = vperm.xlu1 %845, %v269_v29   ;;  %v538_v29 = vld [vmem:[#allocation5 + $0x340] sm:$0xff]  ;;  %593 = vmatpush.msra.mxu3 %v474_v31  ;;  %v485_v31 = vld [vmem:[#allocation5 + $0x198] sm:$0xff] }
 0x1f3   :  { %633 = vmatpush.msrb.mxu0 %v538_v29  ;;  %645 = vmatpush.msrb.mxu2 %v459_v7  ;;  %v549_v29 = vld [vmem:[#allocation5 + $0x398] sm:$0xff]  ;;  %v443_v7 = vld [vmem:[#allocation5 + $0x48] sm:$0xff] }
 0x1f4   :  { %594 = vmatpush.msra.mxu3 %v472_v36  ;;  %v547_v36 = vld [vmem:[#allocation5 + $0x388] sm:$0xff] }
 0x1f5   :  { %634 = vmatpush.msrb.mxu0 %v536_v33  ;;  %646 = vmatpush.msrb.mxu2 %v457_v17 }
 0x1f6   :  { %595 = vmatpush.msra.mxu3 %v470_v40 }
 0x1f7   :  { %635 = vmatpush.msrb.mxu0 %v534_v38  ;;  %647 = vmatpush.msrb.mxu2 %v455_v26  ;;  %v483_v38 = vld [vmem:[#allocation5 + $0x188] sm:$0xff] }
 0x1f8   :  { %596 = vmatpush.msra.mxu3 %v468_v44 }
 0x1f9   :  { %317 = vperm.xlu2 %846, %v294_v28   ;;  %v506_v28 = vld [vmem:[#allocation5 + $0x240] sm:$0xff]  ;;  %636 = vmatpush.msrb.mxu0 %v532_v42  ;;  %v481_v42 = vld [vmem:[#allocation5 + $0x178] sm:$0xff] }
 0x1fa   :  { %613 = vmatpush.msrb.mxu1 %v506_v28  ;;  %597 = vmatpush.msra.mxu3 %v466_v50  ;;  %v517_v28 = vld [vmem:[#allocation5 + $0x298] sm:$0xff] }
 0x1fb   :  { %637 = vmatpush.msrb.mxu0 %v530_v46  ;;  %648 = vmatpush.msrb.mxu2 %v453_v30  ;;  %v439_v30 = vld [vmem:[#allocation5 + $0x28] sm:$0xff] }
 0x1fc   :  { %614 = vmatpush.msrb.mxu1 %v504_v32  ;;  %662 = vmatpush.msrb.mxu3 %v497_v53 }
 0x1fd   :  { %702 = vmatpush.msra.mxu0 %v561_v48 }
 0x1fe   :  { %615 = vmatpush.msrb.mxu1 %v502_v37  ;;  %663 = vmatpush.msrb.mxu3 %v495_v57  ;;  %v451_v37 = vld [vmem:[#allocation5 + $0x88] sm:$0xff] }
 0x1ff   :  { %703 = vmatpush.msra.mxu0 %v559_v55  ;;  %649 = vmatpush.msrb.mxu2 %v451_v37  ;;  %v541_v55 = vld [vmem:[#allocation5 + $0x358] sm:$0xff] }
 0x200   :  { %616 = vmatpush.msrb.mxu1 %v500_v41  ;;  %664 = vmatpush.msrb.mxu3 %v493_v62  ;;  %v545_v41 = vld [vmem:[#allocation5 + $0x378] sm:$0xff] }
 0x201   :  { %704 = vmatpush.msra.mxu0 %v557_v60  ;;  %v947_v60 = vmov 32.0  }
 0x202   :  { %617 = vmatpush.msrb.mxu1 %v498_v45  ;;  %665 = vmatpush.msrb.mxu3 %v491_v8  ;;  %v543_v45 = vld [vmem:[#allocation5 + $0x368] sm:$0xff]  ;;  %854 = vrcp.f32 %v947_v60 }
 0x203   :  { %705 = vmatpush.msra.mxu0 %v555_v3  ;;  %v539_v3 = vld [vmem:[#allocation5 + $0x348] sm:$0xff] }
 0x204   :  { %682 = vmatpush.msra.mxu1 %v529_v47  ;;  %666 = vmatpush.msrb.mxu3 %v489_v22  ;;  %v475_v8 = vld [vmem:[#allocation5 + $0x148] sm:$0xff]  ;;  %v537_v22 = vld [vmem:[#allocation5 + $0x338] sm:$0xff] }
 0x205   :  { %706 = vmatpush.msra.mxu0 %v553_v16 }
 0x206   :  { %683 = vmatpush.msra.mxu1 %v527_v54  ;;  %667 = vmatpush.msrb.mxu3 %v487_v27 }
 0x207   :  { %707 = vmatpush.msra.mxu0 %v551_v24  ;;  %v473_v24 = vld [vmem:[#allocation5 + $0x138] sm:$0xff] }
 0x208   :  { %684 = vmatpush.msra.mxu1 %v525_v58  ;;  %668 = vmatpush.msrb.mxu3 %v485_v31  ;;  %v445_v58 = vld [vmem:[#allocation5 + $0x58] sm:$0xff]  ;;  %v471_v31 = vld [vmem:[#allocation5 + $0x128] sm:$0xff] }
 0x209   :  { %708 = vmatpush.msra.mxu0 %v549_v29  ;;  %v535_v29 = vld [vmem:[#allocation5 + $0x328] sm:$0xff] }
 0x20a   :  { %685 = vmatpush.msra.mxu1 %v523_v63  ;;  %669 = vmatpush.msrb.mxu3 %v483_v38 }
 0x20b   :  { %709 = vmatpush.msra.mxu0 %v547_v36 }
 0x20c   :  { %686 = vmatpush.msra.mxu1 %v521_v15  ;;  %670 = vmatpush.msrb.mxu3 %v481_v42  ;;  %v505_v15 = vld [vmem:[#allocation5 + $0x238] sm:$0xff] }
 0x20d   :  { %710 = vmatpush.msra.mxu0 %v545_v41  ;;  %v533_v41 = vld [vmem:[#allocation5 + $0x318] sm:$0xff] }
 0x20e   :  { %687 = vmatpush.msra.mxu1 %v519_v23  ;;  %v441_v23 = vld [vmem:[#allocation5 + $0x38] sm:$0xff] }
 0x20f   :  { %711 = vmatpush.msra.mxu0 %v543_v45 }
 0x210   :  { %688 = vmatpush.msra.mxu1 %v517_v28  ;;  %v503_v28 = vld [vmem:[#allocation5 + $0x228] sm:$0xff] }
 0x211   :  { %712 = vmatpush.msra.mxu0 %v541_v55 }
 0x212   :  { %689 = vmatpush.msra.mxu1 %v515_v35 }
 0x213   :  { %713 = vmatpush.msra.mxu0 %v539_v3 }
 0x215   :  { %714 = vmatpush.msra.mxu0 %v537_v22 }
 0x217   :  { %715 = vmatpush.msra.mxu0 %v535_v29 }
 0x219   :  { %716 = vmatpush.msra.mxu0 %v533_v41 }
 0x22b   :  { %v1080_v34 = vpop.permute.xlu2 %280 }
 0x22c   :  { %v1136_v42 = vmul.f32 %v1080_v34, %v1010_v12  ;;  %v531_v12 = vld [vmem:[#allocation5 + $0x308] sm:$0xff] }
 0x22d   :  { %717 = vmatpush.msra.mxu0 %v531_v12 }
 0x233   :  { %v306_v59 = vpop.permute.xlu2 %305 }
 0x234   :  { %v1089_v39 = vmul.f32 %v306_v59, %v1004_v9  ;;  %v1092_v40 = vmul.f32 %v306_v59, %v1006_v10  ;;  %v511_v9 = vld [vmem:[#allocation5 + $0x268] sm:$0xff]  ;;  %v477_v59 = vld [vmem:[#allocation5 + $0x158] sm:$0xff] }
 0x243   :  { %v300_v51 = vpop.permute.xlu0 %299  ;;  %v312_v25 = vpop.permute.xlu2 %311 }
 0x244   :  { %v1083_v32 = vmul.f32 %v300_v51, %v986_v0  ;;  %v1086_v33 = vmul.f32 %v300_v51, %v988_v1  ;;  %v513_v0 = vld [vmem:[#allocation5 + $0x278] sm:$0xff]  ;;  %v1101_v46 = vmul.f32 %v312_v25, %v1012_v13  ;;  %v1104_v47 = vmul.f32 %v312_v25, %v1014_v14  ;;  %v275_v52 = vpop.permute.xlu1 %274  ;;  %v479_v13 = vld [vmem:[#allocation5 + $0x168] sm:$0xff]  ;;  %v1122_v51 = vpop.eup %854 }
 0x245   :  { %v449_v1 = vld [vmem:[#allocation5 + $0x78] sm:$0xff]  ;;  %690 = vmatpush.msra.mxu1 %v513_v0  ;;  %671 = vmatpush.msrb.mxu3 %v479_v13  ;;  %v1125_v35 = vmul.f32 %v275_v52, %v990_v2  ;;  %v1128_v36 = vmul.f32 %v275_v52, %v994_v4  ;;  %v372_v2 = vmul.f32 32.0, %v1122_v51  ;;  %v467_v52 = vld [vmem:[#allocation5 + $0x108] sm:$0xff]  ;;  %vm376_vm13 = vweird.f32 %v1122_v51 }
 0x246   :  { %v353_v43 = vadd.f32 %v1089_v39, %v1083_v32  ;;  %v362_v44 = vadd.f32 %v1092_v40, %v1086_v33  ;;  %v400_v10 = vmax.f32 %v1083_v32, %v1089_v39  ;;  %v409_v50 = vmax.f32 %v1086_v33, %v1092_v40  ;;  %650 = vmatpush.msrb.mxu2 %v449_v1  ;;  %v509_v14 = vld [vmem:[#allocation5 + $0x258] sm:$0xff] }
 0x247   :  { %691 = vmatpush.msra.mxu1 %v511_v9  ;;  %672 = vmatpush.msrb.mxu3 %v477_v59  ;;  %v501_v0 = vld [vmem:[#allocation5 + $0x218] sm:$0xff]  ;;  %v1132_v1 = vmul.f32 %v1080_v34, %v1008_v11  ;;  %v435_v34 = vld [vmem:[#allocation5 + $0x8] sm:$0xff]  ;;  %v391_v13 = vmax.f32 %v1128_v36, %v1136_v42 }
 0x248   :  { %v354_v56 = vadd.f32 %v353_v43, %v1101_v46  ;;  %v363_v57 = vadd.f32 %v362_v44, %v1104_v47  ;;  %651 = vmatpush.msrb.mxu2 %v447_v49  ;;  %v410_v61 = vmax.f32 %v409_v50, %v1104_v47  ;;  %v437_v4 = vld [vmem:[#allocation5 + $0x18] sm:$0xff] }
 0x249   :  { %692 = vmatpush.msra.mxu1 %v509_v14  ;;  %673 = vmatpush.msrb.mxu3 %v475_v8  ;;  %v469_v11 = vld [vmem:[#allocation5 + $0x118] sm:$0xff]  ;;  %v373_v14 = vsub.f32 1.0, %v372_v2 }
 0x24a   :  { %652 = vmatpush.msrb.mxu2 %v445_v58 }
 0x24b   :  { %674 = vmatpush.msrb.mxu3 %v473_v24 }
 0x24c   :  { %653 = vmatpush.msrb.mxu2 %v443_v7 }
 0x24d   :  { %675 = vmatpush.msrb.mxu3 %v471_v31 }
 0x24e   :  { %654 = vmatpush.msrb.mxu2 %v441_v23 }
 0x24f   :  { %676 = vmatpush.msrb.mxu3 %v469_v11 }
 0x250   :  { %655 = vmatpush.msrb.mxu2 %v439_v30 }
 0x251   :  { %677 = vmatpush.msrb.mxu3 %v467_v52 }
 0x252   :  { %656 = vmatpush.msrb.mxu2 %v437_v4 }
 0x253   :  { %v318_v48 = vpop.permute.xlu2 %317 }
 0x254   :  { %v1109_v53 = vmul.f32 %v318_v48, %v1022_v18  ;;  %v1112_v54 = vmul.f32 %v318_v48, %v1024_v19  ;;  %v401_v18 = vmax.f32 %v400_v10, %v1101_v46  ;;  %v507_v19 = vld [vmem:[#allocation5 + $0x248] sm:$0xff]  ;;  %v287_v27 = vpop.permute.xlu1 %286  ;;  %v344_v48 = vadd.f32 %v1136_v42, %v1128_v36  ;;  %657 = vmatpush.msrb.mxu2 %v435_v34 }
 0x255   :  { %693 = vmatpush.msra.mxu1 %v507_v19  ;;  %v1139_v43 = vmul.f32 %v287_v27, %v996_v5  ;;  %v1143_v45 = vmul.f32 %v287_v27, %v998_v6  ;;  %v499_v10 = vld [vmem:[#allocation5 + $0x208] sm:$0xff]  ;;  %v335_v5 = vadd.f32 %v1132_v1, %v1125_v35  ;;  %v382_v6 = vmax.f32 %v1125_v35, %v1132_v1 }
 0x256   :  { %v355_v62 = vadd.f32 %v354_v56, %v1109_v53  ;;  %v364_v63 = vadd.f32 %v363_v57, %v1112_v54  ;;  %v402_v16 = vmax.f32 %v401_v18, %v1109_v53  ;;  %v411_v17 = vmax.f32 %v410_v61, %v1112_v54 }
 0x257   :  { %694 = vmatpush.msra.mxu1 %v505_v15  ;;  %v336_v57 = vadd.f32 %v335_v5, %v1139_v43  ;;  %v345_v58 = vadd.f32 %v344_v48, %v1143_v45  ;;  %v383_v60 = vmax.f32 %v382_v6, %v1139_v43  ;;  %v392_v18 = vmax.f32 %v391_v13, %v1143_v45 }
 0x258   :  { %v356_v25 = vrot.slane %v355_v62, 4  ;;  %v365_v26 = vrot.slane %v364_v63, 4  ;;  %v403_v37 = vrot.slane %v402_v16, 4  ;;  %v412_v38 = vrot.slane %v411_v17, 4 }
 0x259   :  { %695 = vmatpush.msra.mxu1 %v503_v28 }
 0x25a   :  { %v357_v44 = vadd.f32 %v356_v25, %v355_v62  ;;  %v366_v9 = vadd.f32 %v365_v26, %v364_v63  ;;  %v404_v49 = vmax.f32 %v402_v16, %v403_v37  ;;  %v413_v50 = vmax.f32 %v411_v17, %v412_v38 }
 0x25b   :  { %696 = vmatpush.msra.mxu1 %v501_v0  ;;  %v374_v17 = vmul.f32 %v1122_v51, %v373_v14 }
 0x25c   :  { %v358_v55 = vrot.slane %v357_v44, 2  ;;  %v367_v56 = vrot.slane %v366_v9, 2  ;;  %v405_v62 = vrot.slane %v404_v49, 2  ;;  %v414_v63 = vrot.slane %v413_v50, 2 }
 0x25d   :  { %697 = vmatpush.msra.mxu1 %v499_v10  ;;  %v375_v37 = vadd.f32 %v1122_v51, %v374_v17 }
 0x25e   :  { %v359_v16 = vadd.f32 %v358_v55, %v357_v44  ;;  %v368_v22 = vadd.f32 %v367_v56, %v366_v9  ;;  %v406_v25 = vmax.f32 %v404_v49, %v405_v62  ;;  %v415_v26 = vmax.f32 %v413_v50, %v414_v63 }
 0x25f   :  { %v377_v48 = vsel %vm376_vm13, %v1122_v51, %v375_v37 }
 0x260   :  { %v360_v31 = vrot.slane %v359_v16, 1  ;;  %v369_v38 = vrot.slane %v368_v22, 1  ;;  %v407_v44 = vrot.slane %v406_v25, 1  ;;  %v416_v9 = vrot.slane %v415_v26, 1 }
 0x262   :  { %v361_v5 = vadd.f32 %v360_v31, %v359_v16  ;;  %v370_v49 = vadd.f32 %v369_v38, %v368_v22  ;;  %v408_v14 = vmax.f32 %v406_v25, %v407_v44  ;;  %v417_v55 = vmax.f32 %v415_v26, %v416_v9 }
 0x264   :  { %v293_v59 = vpop.permute.xlu1 %292 }
 0x265   :  { %v1158_v19 = vmul.f32 %v293_v59, %v1026_v20  ;;  %v1161_v61 = vmul.f32 %v293_v59, %v1028_v21 }
 0x267   :  { %v337_v3 = vadd.f32 %v336_v57, %v1158_v19  ;;  %v346_v7 = vadd.f32 %v345_v58, %v1161_v61  ;;  %v384_v8 = vmax.f32 %v383_v60, %v1158_v19  ;;  %v393_v15 = vmax.f32 %v392_v18, %v1161_v61 }
 0x268   :  { %v380_v60 = vmul.f32 %v377_v48, %v361_v5  ;;  %v381_v18 = vmul.f32 %v377_v48, %v370_v49 }
 0x269   :  { %v338_v20 = vrot.slane %v337_v3, 4  ;;  %v347_v23 = vrot.slane %v346_v7, 4  ;;  %v385_v24 = vrot.slane %v384_v8, 4  ;;  %v394_v21 = vrot.slane %v393_v15, 4 }
 0x26b   :  { %v339_v27 = vadd.f32 %v338_v20, %v337_v3  ;;  %v348_v28 = vadd.f32 %v347_v23, %v346_v7  ;;  %v386_v29 = vmax.f32 %v384_v8, %v385_v24  ;;  %v395_v30 = vmax.f32 %v393_v15, %v394_v21 }
 0x26d   :  { %v340_v0 = vrot.slane %v339_v27, 2  ;;  %v349_v41 = vrot.slane %v348_v28, 2  ;;  %v387_v2 = vrot.slane %v386_v29, 2  ;;  %v396_v4 = vrot.slane %v395_v30, 2 }
 0x26f   :  { %v388_v11 = vmax.f32 %v386_v29, %v387_v2  ;;  %v397_v10 = vmax.f32 %v395_v30, %v396_v4  ;;  %v341_v12 = vadd.f32 %v340_v0, %v339_v27  ;;  %v350_v34 = vadd.f32 %v349_v41, %v348_v28 }
 0x271   :  { %v389_v50 = vrot.slane %v388_v11, 1  ;;  %v398_v52 = vrot.slane %v397_v10, 1  ;;  %v342_v6 = vrot.slane %v341_v12, 1  ;;  %v351_v13 = vrot.slane %v350_v34, 1 }
 0x273   :  { %v390_v56 = vmax.f32 %v388_v11, %v389_v50  ;;  %v399_v57 = vmax.f32 %v397_v10, %v398_v52  ;;  %v343_v58 = vadd.f32 %v342_v6, %v341_v12  ;;  %v352_v59 = vadd.f32 %v351_v13, %v350_v34 }
 0x275   :  { %v430_v62 = vsel %vm159_vm4, %v408_v14, %v390_v56  ;;  %v431_v63 = vsel %vm159_vm4, %v417_v55, %v399_v57  ;;  %v378_v3 = vmul.f32 %v377_v48, %v343_v58  ;;  %v379_v7 = vmul.f32 %v377_v48, %v352_v59 }
 0x276   :  { %618 = vmatmul.f32.vlgmr.msrb.gmra.mxu1 %v430_v62  ;;  %638 = vmatmul.f32.vlgmr.msrb.gmra.mxu0 %v431_v63 }
 0x277   :  { %v422_v51 = vsel %vm159_vm4, %v380_v60, %v378_v3  ;;  %v423_v8 = vsel %vm159_vm4, %v381_v18, %v379_v7 }
 0x278   :  { %578 = vmatmul.f32.vlgmr.msra.gmra.mxu2 %v422_v51  ;;  %598 = vmatmul.f32.vlgmr.msra.gmra.mxu3 %v423_v8 }
 0x27e   :  { %698 = vmatmul.f32.vlgmr.msra.gmra.mxu1 %v430_v62  ;;  %718 = vmatmul.f32.vlgmr.msra.gmra.mxu0 %v431_v63 }
 0x280   :  { %658 = vmatmul.f32.vlgmr.msrb.gmra.mxu2 %v422_v51  ;;  %678 = vmatmul.f32.vlgmr.msrb.gmra.mxu3 %v423_v8 }
 0x2f3   :  { %v619_v15 = vpop.f32.mrf.mxu1  ;;  %v639_v20 = vpop.f32.mrf.mxu0 }
 0x2fb   :  { %v579_v16 = vpop.f32.mrf.mxu2  ;;  %v599_v17 = vpop.f32.mrf.mxu3 }
 0x2fc   :  { %v600_v22 = vadd.f32 %v599_v17, %v579_v16  ;;  %v699_v28 = vpop.f32.mrf.mxu1  ;;  %v719_v30 = vpop.f32.mrf.mxu0 }
 0x2fe   :  { %v620_v23 = vadd.f32 %v619_v15, %v600_v22 }
 0x300   :  { %v640_v24 = vadd.f32 %v639_v20, %v620_v23 }
 0x302   :  { %v831_v21 = vmul.f32 -1.442695, %v640_v24 }
 0x303   :  { %v659_v25 = vpop.f32.mrf.mxu2  ;;  %v679_v26 = vpop.f32.mrf.mxu3 }
 0x304   :  { %856 = vpow2.f32 %v831_v21  ;;  %v680_v27 = vadd.f32 %v679_v26, %v659_v25 }
 0x306   :  { %v700_v29 = vadd.f32 %v699_v28, %v680_v27 }
 0x308   :  { %v720_v31 = vadd.f32 %v719_v30, %v700_v29 }
 0x30a   :  { %v857_v37 = vpop.eup %856  ;;  %v832_v38 = vmul.f32 -1.442695, %v720_v31 }
 0x30b   :  { %v728_v0 = vadd.f32 1.0, %v857_v37 }
 0x30c   :  { %858 = vpow2.f32 %v832_v38 }
 0x30d   :  { %860 = vrcp.f32 %v728_v0  ;;  %vm735_vm0 = vweird.f32 %v728_v0  ;;  %v741_v52 = vand.u32 2147483648, %v728_v0  ;;  %v739_v6 = vand.u32 2147483647, %v728_v0 }
 0x30f   :  { %v742_v57 = vor.u32 1.1754944e-38, %v741_v52  ;;  %vm740_vm7 = vcmp.eq.f32.partialorder %v739_v6, 8.507059e+37 }
 0x312   :  { %v859_v41 = vpop.eup %858 }
 0x313   :  { %v861_v2 = vpop.eup %860  ;;  %v729_v4 = vadd.f32 1.0, %v859_v41 }
 0x314   :  { %v731_v44 = vmul.f32 %v861_v2, %v728_v0  ;;  %vm736_vm14 = vweird.f32 %v861_v2 }
 0x315   :  { %862 = vrcp.f32 %v729_v4  ;;  %v756_v5 = vand.u32 2147483648, %v729_v4  ;;  %v754_v50 = vand.u32 2147483647, %v729_v4  ;;  %vm737_vm1 = vmor %vm735_vm0, %vm736_vm14  ;;  %vm750_vm2 = vweird.f32 %v729_v4 }
 0x316   :  { %v732_v9 = vsub.f32 1.0, %v731_v44 }
 0x317   :  { %v757_v14 = vor.u32 1.1754944e-38, %v756_v5  ;;  %vm755_vm5 = vcmp.eq.f32.partialorder %v754_v50, 8.507059e+37 }
 0x318   :  { %v733_v10 = vmul.f32 %v861_v2, %v732_v9 }
 0x31a   :  { %v734_v48 = vadd.f32 %v861_v2, %v733_v10 }
 0x31b   :  { %v863_v11 = vpop.eup %862 }
 0x31c   :  { %v746_v12 = vmul.f32 %v863_v11, %v729_v4  ;;  %vm751_vm15 = vweird.f32 %v863_v11  ;;  %v738_v55 = vsel %vm737_vm1, %v861_v2, %v734_v48 }
 0x31d   :  { %vm752_vm3 = vmor %vm750_vm2, %vm751_vm15  ;;  %v743_v60 = vsel %vm740_vm7, %v742_v57, %v738_v55 }
 0x31e   :  { %v747_v34 = vsub.f32 1.0, %v746_v12 }
 0x320   :  { %v748_v49 = vmul.f32 %v863_v11, %v747_v34 }
 0x322   :  { %v749_v13 = vadd.f32 %v863_v11, %v748_v49 }
 0x324   :  { %v753_v56 = vsel %vm752_vm3, %v863_v11, %v749_v13 }
 0x325   :  { %v758_v58 = vsel %vm755_vm5, %v757_v14, %v753_v56 }
 0x326   :  { %v762_v59 = vrot.slane %v758_v58, 7 }
 0x328   :  { %v764_v18 = vsel %vm763_vm6, %v743_v60, %v762_v59  ;;  %v765_v62 = vsel %vm159_vm4, %v743_v60, %v762_v59 }
 0x329   :  { %v766_v63 = vrot.slane %v765_v62, 1  ;;  %v767_v3 = vperm.slane %v764_v18, 0  ;;  %v768_v7 = vperm.slane %v764_v18, 1 }
 0x32b   :  { %v775_v51 = vmul.f32 %v767_v3, %v1125_v35  ;;  %v776_v8 = vmul.f32 %v768_v7, %v1128_v36  ;;  %v777_v15 = vmul.f32 %v767_v3, %v1132_v1  ;;  %v778_v16 = vmul.f32 %v768_v7, %v1136_v42 }
 0x32c   :  { %v769_v17 = vperm.slane %v766_v63, 0  ;;  %v779_v22 = vmul.f32 %v767_v3, %v1139_v43  ;;  %v770_v20 = vperm.slane %v766_v63, 1  ;;  %v780_v23 = vmul.f32 %v768_v7, %v1143_v45 }
 0x32d   :  { %791 = vst [vmem:[#allocation7] sm:$0xff] %v775_v51  ;;  %v781_v24 = vmul.f32 %v767_v3, %v1158_v19  ;;  %v782_v21 = vmul.f32 %v768_v7, %v1161_v61 }
 0x32e   :  { %792 = vst [vmem:[#allocation7 + $0x8] sm:$0xff] %v776_v8  ;;  %v783_v35 = vmul.f32 %v769_v17, %v1083_v32  ;;  %v784_v36 = vmul.f32 %v770_v20, %v1086_v33  ;;  %v785_v1 = vmul.f32 %v769_v17, %v1089_v39  ;;  %v786_v42 = vmul.f32 %v770_v20, %v1092_v40 }
 0x32f   :  { %793 = vst [vmem:[#allocation7 + $0x10] sm:$0xff] %v777_v15  ;;  %v787_v43 = vmul.f32 %v769_v17, %v1101_v46  ;;  %v788_v45 = vmul.f32 %v770_v20, %v1104_v47  ;;  %v789_v19 = vmul.f32 %v769_v17, %v1109_v53  ;;  %v790_v32 = vmul.f32 %v770_v20, %v1112_v54 }
 0x330   :  { %794 = vst [vmem:[#allocation7 + $0x18] sm:$0xff] %v778_v16 }
 0x331   :  { %795 = vst [vmem:[#allocation7 + $0x20] sm:$0xff] %v779_v22 }
 0x332   :  { %796 = vst [vmem:[#allocation7 + $0x28] sm:$0xff] %v780_v23 }
 0x333   :  { %797 = vst [vmem:[#allocation7 + $0x30] sm:$0xff] %v781_v24 }
 0x334   :  { %798 = vst [vmem:[#allocation7 + $0x38] sm:$0xff] %v782_v21 }
 0x335   :  { %799 = vst [vmem:[#allocation7 + $0x40] sm:$0xff] %v783_v35 }
 0x336   :  { %800 = vst [vmem:[#allocation7 + $0x48] sm:$0xff] %v784_v36 }
 0x337   :  { %801 = vst [vmem:[#allocation7 + $0x50] sm:$0xff] %v785_v1 }
 0x338   :  { %802 = vst [vmem:[#allocation7 + $0x58] sm:$0xff] %v786_v42 }
 0x339   :  { %803 = vst [vmem:[#allocation7 + $0x60] sm:$0xff] %v787_v43 }
 0x33a   :  { %804 = vst [vmem:[#allocation7 + $0x68] sm:$0xff] %v788_v45 }
 0x33b   :  { %805 = vst [vmem:[#allocation7 + $0x70] sm:$0xff] %v789_v19 }
 0x33c   :  { %806 = vst [vmem:[#allocation7 + $0x78] sm:$0xff] %v790_v32 }
 0x33d   :  { %819 = dma.vmem_to_hbm [thread:$0]  %s812_s8, 2048, %s814_s11, [#allocation4], %s943_s23, %s943_s23, %s944_s24  }
 0x33e   :  { %940 = dma.done.wait [#allocation4], 2048  }
 0x33f   :  { %941 = vsyncadd [#allocation4], 4294965248 }
 0x340   :  { %824 = vsyncpa [#allocation3], 1 }
 0x341   :  { %825 = vsyncpa [#allocation6], 1 }
 0x342   :  { %826 = vsyncpa [#allocation4], 1 }

</bundles_post_ra>
